<compile_context>
chip_gen: v7x
topology: tpu7x:2x2x1
jax: 0.10.0
libtpu: 0.0.40
codegen_flags: <defaults>
</compile_context>

<pallas_src>
import functools
import math

import jax
import jax.numpy as jnp
from jax import lax
from jax.experimental import pallas as pl
from jax.experimental.pallas import tpu as pltpu


def _round_up(n, m):
    return ((n + m - 1) // m) * m


def _fused_conv_kernel(w_ref, bg_ref, xc_ref, *rest, K, stride, dilation,
                       leakiness, apply_act, has_gamma, has_res, need_next):
    """One ConvSequence layer on one (batch, time-tile) block.

    Conv1d as in-register im2col -> single MXU matmul (f32 accumulate), fused
    with bias, LeakyReLU, LayerScale and the residual add.  The activation
    makes exactly one HBM read and one HBM write per layer.
    """
    if need_next:
        xn_ref, out_ref = rest
    else:
        (out_ref,) = rest

    cur_planes = {}
    nxt_planes = {}
    pieces = []
    for k in range(K):
        # Static per-tap lane offset (q) and stride phase (r): input position
        # t*stride + k*dilation == phase-plane r, lane t + q.
        q, r = divmod(k * dilation, stride)
        if r not in cur_planes:
            cur_planes[r] = xc_ref[0, r]                      # (C_in, tile)
        cur = cur_planes[r]
        if q == 0:
            xs = cur
        else:
            if r not in nxt_planes:
                nxt_planes[r] = xn_ref[0, r]                  # (C_in, halo)
            xs = jnp.concatenate([cur[:, q:], nxt_planes[r][:, :q]], axis=-1)
        pieces.append(xs)

    # In-register im2col: (K*C_in, tile), k-major / channel-minor, matching the
    # flattened weight layout.  One matmul with contraction dim K*C_in.
    cols = pieces[0] if K == 1 else jnp.concatenate(pieces, axis=0)
    z = jnp.dot(w_ref[...], cols.astype(w_ref.dtype),
                preferred_element_type=jnp.float32)           # (C_out, tile), f32

    z = z + bg_ref[:, 0:1]                                    # bias
    if apply_act:
        z = jnp.where(z >= 0, z, jnp.float32(leakiness) * z)  # LeakyReLU
    if has_gamma:
        z = z * bg_ref[:, 1:2]                                # LayerScale (boost folded)
    if has_res:
        # stride==1, odd K, pad == dil*(K//2): the centre tap IS x at the same
        # output position, already resident in VMEM (kept in the input dtype,
        # so the residual add is exact even with bf16 MXU operands).
        z = z + pieces[K // 2].astype(jnp.float32)
    out_ref[0] = z.astype(out_ref.dtype)


def _choose_tile(T_out, stride, C_in, C_out, K, act_bytes, w_bytes, t_tile, budget):
    """Largest lane-dense time tile that fits the per-layer VMEM budget."""
    tile = min(_round_up(t_tile, 128), _round_up(max(T_out, 1), 128))

    def footprint(t):
        x_blk = stride * C_in * t * act_bytes          # current x tile
        halo_blk = stride * C_in * 128 * act_bytes     # halo sliver
        o_blk = C_out * t * act_bytes                  # output tile
        resident = K * C_in * C_out * w_bytes + C_out * 2 * 4
        return 2 * (x_blk + halo_blk + o_blk) + 2 * resident   # double-buffered

    while tile > 128 and footprint(tile) > budget:
        tile = max(128, _round_up(tile // 2, 128))
    vmem_limit = int(min(64 * 2**20, max(32 * 2**20, 2 * footprint(tile))))
    return tile, vmem_limit


def conv1d_fused_layer(x, weight, bias, *, stride, padding, dilation, leakiness,
                       apply_act=True, gamma=None, fuse_residual=False,
                       t_tile=1024, mxu_dtype=None, vmem_budget=24 * 2**20):
    """One ConvSequence layer as a single fused Pallas kernel.

    x:      [B, C_in, T]
    weight: [C_out, C_in, K]   (PyTorch Conv1d layout)
    bias:   [C_out]
    gamma:  optional [C_out]   (LayerScale with boost already folded in, f32)
    """
    B, C_in, T = x.shape
    C_out, C_in_w, K = weight.shape
    assert C_in_w == C_in, "groups != 1 not supported"   # TODO(synk): grouped conv
    T_out = (T + 2 * padding - dilation * (K - 1) - 1) // stride + 1
    assert T_out >= 1
    if fuse_residual:
        assert (stride == 1 and K % 2 == 1 and padding == (K // 2) * dilation
                and C_out == C_in and T_out == T)

    act_dt = jnp.dtype(x.dtype)
    mdt = jnp.dtype(mxu_dtype) if mxu_dtype is not None else act_dt
    tile, vmem_limit = _choose_tile(T_out, stride, C_in, C_out, K,
                                    act_dt.itemsize, mdt.itemsize,
                                    t_tile, vmem_budget)
    n_t = pl.cdiv(T_out, tile)
    q_max = ((K - 1) * dilation) // stride
    assert q_max <= tile, "dilation too large for the chosen time tile"
    need_next = q_max > 0
    halo = 128 if q_max <= 128 else tile                 # halo sliver width (lanes)

    # Single O(input) wrapper-side layout pass (NOT K-duplicated im2col):
    # bake the left conv zero-padding, right-pad with one extra zero tile for
    # the halo, and de-interleave stride phases so every in-kernel tap is a
    # contiguous lane slice.  x_ph[b, r, c, u] = x_pad[b, c, u*stride + r].
    Lpad = (n_t + 1) * tile * stride
    pad_r = Lpad - padding - T
    assert pad_r >= 0
    x_pad = jnp.pad(x, ((0, 0), (0, 0), (padding, pad_r)))
    U = Lpad // stride
    x_ph = x_pad.reshape(B, C_in, U, stride).transpose(0, 3, 1, 2)  # (B, stride, C_in, U)

    # Flattened weights (k-major, channel-minor), cast once to the MXU dtype.
    w_flat = jnp.transpose(weight, (0, 2, 1)).reshape(C_out, K * C_in).astype(mdt)
    # bias / LayerScale gamma merged into one tiny resident f32 operand.
    g = jnp.ones((C_out,), jnp.float32) if gamma is None else gamma.astype(jnp.float32)
    bg = jnp.stack([bias.astype(jnp.float32), g], axis=1)           # (C_out, 2)

    inputs = [w_flat, bg, x_ph]
    in_specs = [
        pl.BlockSpec((C_out, K * C_in), lambda b, t: (0, 0)),        # weights (resident)
        pl.BlockSpec((C_out, 2), lambda b, t: (0, 0)),               # bias | gamma
        pl.BlockSpec((1, stride, C_in, tile), lambda b, t: (b, 0, 0, t)),
    ]
    if need_next:
        hpt = tile // halo
        # Same x_ph buffer, tiny halo view one tile ahead: ~(halo/tile) extra
        # input reads instead of re-materializing overlapping windows.
        in_specs.append(pl.BlockSpec((1, stride, C_in, halo),
                                     lambda b, t: (b, 0, 0, (t + 1) * hpt)))
        inputs.append(x_ph)

    kernel = functools.partial(
        _fused_conv_kernel, K=K, stride=stride, dilation=dilation,
        leakiness=float(leakiness), apply_act=apply_act,
        has_gamma=gamma is not None, has_res=fuse_residual, need_next=need_next)

    out = pl.pallas_call(
        kernel,
        out_shape=jax.ShapeDtypeStruct((B, C_out, n_t * tile), x.dtype),
        grid_spec=pltpu.PrefetchScalarGridSpec(
            num_scalar_prefetch=0,
            grid=(B, n_t),      # both parallel: shards across megacore / v7x's 2 TCs
            in_specs=in_specs,
            out_specs=pl.BlockSpec((1, C_out, tile), lambda b, t: (b, 0, t)),
        ),
        compiler_params=pltpu.CompilerParams(
            dimension_semantics=("parallel", "parallel"),
            vmem_limit_bytes=vmem_limit,
        ),
    )(*inputs)
    if n_t * tile != T_out:
        out = out[:, :, :T_out]
    return out


def conv_sequence_forward(x, params, *, kernel=4, stride=2, dilation_growth=1,
                          dilation_period=None, leakiness=0.0, skip=False,
                          scale=None, boost=5.0, activation_on_last=True,
                          t_tile=1024, mxu_dtype=None):
    """Mirror of ConvSequence.forward for the supported configuration."""
    dilation = 1
    n_layers = len(params)
    for k, p in enumerate(params):
        if dilation_growth > 1:
            assert kernel % 2 == 1, "dilation supports only odd kernels"
        if dilation_period and k % dilation_period == 0:
            dilation = 1
        pad = (kernel // 2) * dilation
        chout, chin, _ = p["weight"].shape
        T = x.shape[-1]
        T_out = (T + 2 * pad - dilation * (kernel - 1) - 1) // stride + 1
        is_last = k == n_layers - 1
        use_ls = skip and chin == chout and scale is not None
        gamma = boost * p["ls_scale"] if use_ls else None     # fold boost once, in f32
        use_res = skip and chin == chout and T_out == T       # x.shape == old_x.shape
        fast_res = (use_res and stride == 1 and kernel % 2 == 1
                    and pad == (kernel // 2) * dilation)
        y = conv1d_fused_layer(
            x, p["weight"], p["bias"], stride=stride, padding=pad,
            dilation=dilation, leakiness=leakiness,
            apply_act=activation_on_last or not is_last,
            gamma=gamma, fuse_residual=fast_res,
            t_tile=t_tile, mxu_dtype=mxu_dtype)
        if use_res and not fast_res:
            y = y + x   # TODO(synk): rare geometry (stride>1 shape match); unfused add
        x = y
        dilation *= dilation_growth
    return x


def reference_forward(x, params, *, kernel=4, stride=2, dilation_growth=1,
                      dilation_period=None, leakiness=0.0, skip=False,
                      scale=None, boost=5.0, activation_on_last=True, **_):
    """Pure-JAX reference mirroring the PyTorch ConvSequence forward."""
    dilation = 1
    n_layers = len(params)
    for k, p in enumerate(params):
        if dilation_period and k % dilation_period == 0:
            dilation = 1
        pad = (kernel // 2) * dilation
        old_x = x
        y = lax.conv_general_dilated(
            x, p["weight"], window_strides=(stride,), padding=[(pad, pad)],
            rhs_dilation=(dilation,), dimension_numbers=("NCH", "OIH", "NCH"))
        y = y + p["bias"][None, :, None]
        if activation_on_last or k < n_layers - 1:
            y = jnp.where(y >= 0, y, leakiness * y)
        chout, chin = p["weight"].shape[0], p["weight"].shape[1]
        if skip and chin == chout and scale is not None:
            y = boost * p["ls_scale"][None, :, None] * y
        if skip and y.shape == old_x.shape:
            y = y + old_x
        x = y
        dilation *= dilation_growth
    return x


if __name__ == "__main__":
    key = jax.random.PRNGKey(0)

    def make_params(key, channels, kernel, skip, scale, boost):
        params = []
        for chin, chout in zip(channels[:-1], channels[1:]):
            key, kw, kb = jax.random.split(key, 3)
            fan_in = chin * kernel
            w = jax.random.normal(kw, (chout, chin, kernel),
                                  jnp.float32) / math.sqrt(fan_in)
            b = 0.1 * jax.random.normal(kb, (chout,), jnp.float32)
            p = {"weight": w, "bias": b}
            if skip and chin == chout and scale is not None:
                # LayerScale init: scale.data[:] = init / boost
                p["ls_scale"] = jnp.full((chout,), scale / boost, jnp.float32)
            params.append(p)
        return key, params

    configs = [
        # Module defaults: kernel=4, stride=2 (downsampling path, LayerScale only).
        ("default_k4s2", (4, 8, 8), 64,
         dict(kernel=4, stride=2, dilation_growth=1, dilation_period=None,
              leakiness=0.0, skip=True, scale=0.1, boost=5.0)),
        # Dilated stride-1 path exercising the fused residual + LayerScale.
        ("dilated_k3s1_residual", (4, 8, 8), 48,
         dict(kernel=3, stride=1, dilation_growth=2, dilation_period=None,
              leakiness=0.02, skip=True, scale=0.1, boost=5.0)),
    ]

    for name, channels, T, cfg in configs:
        key, params = make_params(key, channels, cfg["kernel"], cfg["skip"],
                                  cfg["scale"], cfg["boost"])
        key, kx = jax.random.split(key)
        x = jax.random.normal(kx, (2, channels[0], T), jnp.float32)
        ref = reference_forward(x, params, **cfg)

        # Exact path: f32 MXU operands.
        out = jax.block_until_ready(conv_sequence_forward(x, params, **cfg))
        assert out.shape == ref.shape, (name, out.shape, ref.shape)
        err = float(jnp.max(jnp.abs(out - ref)))
        assert jnp.allclose(out, ref, atol=2e-5, rtol=2e-5), (name, "f32", err)

        # Fast path: bf16 MXU operands, f32 accumulate / epilogue / residual.
        out_bf = jax.block_until_ready(
            conv_sequence_forward(x, params, mxu_dtype=jnp.bfloat16, **cfg))
        err_bf = float(jnp.max(jnp.abs(out_bf - ref)))
        assert jnp.allclose(out_bf, ref, atol=5e-2, rtol=5e-2), (name, "bf16", err_bf)

    print("KERNEL_OK")
</pallas_src>

<mosaic_0001>
module attributes {stable_mosaic.version = 11 : i64} {
  func.func @_fused_conv_kernel(%arg0: i32, %arg1: i32, %arg2: memref<8x16xf32, #tpu.memory_space<vmem>>, %arg3: memref<8x2xf32, #tpu.memory_space<vmem>>, %arg4: memref<1x2x4x128xf32, #tpu.memory_space<vmem>>, %arg5: memref<1x2x4x128xf32, #tpu.memory_space<vmem>>, %arg6: memref<1x8x128xf32, #tpu.memory_space<vmem>>) attributes {dimension_semantics = [#tpu.dimension_semantics<parallel>, #tpu.dimension_semantics<parallel>], iteration_bounds = array<i64: 2, 1>, scalar_prefetch = 0 : i64, scratch_operands = 0 : i64, tpu.core_type = #tpu.core_type<tc>, window_params = [{pipeline_mode = #tpu.pipeline_mode<synchronous>, transform_indices = @transform_0, window_bounds = array<i64: 8, 16>}, {pipeline_mode = #tpu.pipeline_mode<synchronous>, transform_indices = @transform_1, window_bounds = array<i64: 8, 2>}, {transform_indices = @transform_2, window_bounds = array<i64: 1, 2, 4, 128>}, {transform_indices = @transform_3, window_bounds = array<i64: 1, 2, 4, 128>}, {transform_indices = @transform_4, window_bounds = array<i64: 1, 8, 128>}]} {
    %c0 = arith.constant 0 : index
    %c0_0 = arith.constant 0 : index
    %c0_1 = arith.constant 0 : index
    %c0_2 = arith.constant 0 : index
    %0 = vector.load %arg4[%c0, %c0_0, %c0_1, %c0_2] : memref<1x2x4x128xf32, #tpu.memory_space<vmem>>, vector<1x1x4x128xf32>
    %1 = vector.shape_cast %0 : vector<1x1x4x128xf32> to vector<4x128xf32>
    %c0_3 = arith.constant 0 : index
    %c1 = arith.constant 1 : index
    %c0_4 = arith.constant 0 : index
    %c0_5 = arith.constant 0 : index
    %2 = vector.load %arg4[%c0_3, %c1, %c0_4, %c0_5] : memref<1x2x4x128xf32, #tpu.memory_space<vmem>>, vector<1x1x4x128xf32>
    %3 = vector.shape_cast %2 : vector<1x1x4x128xf32> to vector<4x128xf32>
    %c0_6 = arith.constant 0 : index
    %c0_7 = arith.constant 0 : index
    %c0_8 = arith.constant 0 : index
    %c0_9 = arith.constant 0 : index
    %4 = vector.load %arg5[%c0_6, %c0_7, %c0_8, %c0_9] : memref<1x2x4x128xf32, #tpu.memory_space<vmem>>, vector<1x1x4x128xf32>
    %5 = vector.shape_cast %4 : vector<1x1x4x128xf32> to vector<4x128xf32>
    %6 = vector.extract_strided_slice %1 {offsets = [0, 1], sizes = [4, 127], strides = [1, 1]} : vector<4x128xf32> to vector<4x127xf32>
    %7 = vector.extract_strided_slice %5 {offsets = [0, 0], sizes = [4, 1], strides = [1, 1]} : vector<4x128xf32> to vector<4x1xf32>
    %8 = tpu.concatenate %6, %7 in 1 : vector<4x127xf32>, vector<4x1xf32> -> vector<4x128xf32>
    %c0_10 = arith.constant 0 : index
    %c1_11 = arith.constant 1 : index
    %c0_12 = arith.constant 0 : index
    %c0_13 = arith.constant 0 : index
    %9 = vector.load %arg5[%c0_10, %c1_11, %c0_12, %c0_13] : memref<1x2x4x128xf32, #tpu.memory_space<vmem>>, vector<1x1x4x128xf32>
    %10 = vector.shape_cast %9 : vector<1x1x4x128xf32> to vector<4x128xf32>
    %11 = vector.extract_strided_slice %3 {offsets = [0, 1], sizes = [4, 127], strides = [1, 1]} : vector<4x128xf32> to vector<4x127xf32>
    %12 = vector.extract_strided_slice %10 {offsets = [0, 0], sizes = [4, 1], strides = [1, 1]} : vector<4x128xf32> to vector<4x1xf32>
    %13 = tpu.concatenate %11, %12 in 1 : vector<4x127xf32>, vector<4x1xf32> -> vector<4x128xf32>
    %14 = tpu.concatenate %1, %3, %8, %13 in 0 : vector<4x128xf32>, vector<4x128xf32>, vector<4x128xf32>, vector<4x128xf32> -> vector<16x128xf32>
    %c0_14 = arith.constant 0 : index
    %c0_15 = arith.constant 0 : index
    %15 = vector.load %arg2[%c0_14, %c0_15] : memref<8x16xf32, #tpu.memory_space<vmem>>, vector<8x16xf32>
    %cst = arith.constant dense<0.000000e+00> : vector<8x128xf32>
    %16 = tpu.matmul %15, %14, %cst {dimension_numbers = #tpu.dot_dimension_numbers<[1], [0], [0], [1], [0, 0, 1, 1], [], []>} : vector<8x16xf32>, vector<16x128xf32>, vector<8x128xf32> -> vector<8x128xf32>
    %c0_16 = arith.constant 0 : index
    %c0_17 = arith.constant 0 : index
    %17 = vector.load %arg3[%c0_16, %c0_17] : memref<8x2xf32, #tpu.memory_space<vmem>>, vector<8x1xf32>
    %18 = vector.broadcast %17 : vector<8x1xf32> to vector<8x128xf32>
    %19 = arith.addf %16, %18 : vector<8x128xf32>
    %cst_18 = arith.constant 0.000000e+00 : f32
    %20 = vector.broadcast %cst_18 : f32 to vector<8x128xf32>
    %21 = arith.cmpf oge, %19, %20 : vector<8x128xf32>
    %cst_19 = arith.constant 0.000000e+00 : f32
    %22 = vector.broadcast %cst_19 : f32 to vector<8x128xf32>
    %23 = arith.mulf %22, %19 : vector<8x128xf32>
    %24 = arith.select %21, %19, %23 : vector<8x128xi1>, vector<8x128xf32>
    %c0_20 = arith.constant 0 : index
    %c0_21 = arith.constant 0 : index
    %c0_22 = arith.constant 0 : index
    %25 = vector.load %arg6[%c0_20, %c0_21, %c0_22] : memref<1x8x128xf32, #tpu.memory_space<vmem>>, vector<1x8x128xf32>
    %26 = vector.shape_cast %25 : vector<1x8x128xf32> to vector<8x128xf32>
    %27 = vector.shape_cast %24 : vector<8x128xf32> to vector<1x8x128xf32>
    tpu.vector_store %arg6[%c0_20, %c0_21, %c0_22], %27 {strides = array<i32>} : memref<1x8x128xf32, #tpu.memory_space<vmem>>, vector<1x8x128xf32>,
    return
  }
  func.func @transform_0(%arg0: i32, %arg1: i32) -> (i32, i32) {
    %c0_i32 = arith.constant 0 : i32
    %c0_i32_0 = arith.constant 0 : i32
    %c0_i32_1 = arith.constant 0 : i32
    return %c0_i32, %c0_i32_0 : i32, i32
  }
  func.func @transform_1(%arg0: i32, %arg1: i32) -> (i32, i32) {
    %c0_i32 = arith.constant 0 : i32
    %c0_i32_0 = arith.constant 0 : i32
    %c0_i32_1 = arith.constant 0 : i32
    return %c0_i32, %c0_i32_0 : i32, i32
  }
  func.func @transform_2(%arg0: i32, %arg1: i32) -> (i32, i32, i32, i32) {
    %c0_i32 = arith.constant 0 : i32
    %c0_i32_0 = arith.constant 0 : i32
    %c0_i32_1 = arith.constant 0 : i32
    return %arg0, %c0_i32, %c0_i32_0, %arg1 : i32, i32, i32, i32
  }
  func.func @transform_3(%arg0: i32, %arg1: i32) -> (i32, i32, i32, i32) {
    %c1_i32 = arith.constant 1 : i32
    %0 = arith.addi %arg1, %c1_i32 : i32
    %c1_i32_0 = arith.constant 1 : i32
    %1 = arith.muli %0, %c1_i32_0 : i32
    %c0_i32 = arith.constant 0 : i32
    %c0_i32_1 = arith.constant 0 : i32
    %c0_i32_2 = arith.constant 0 : i32
    return %arg0, %c0_i32, %c0_i32_1, %1 : i32, i32, i32, i32
  }
  func.func @transform_4(%arg0: i32, %arg1: i32) -> (i32, i32, i32) {
    %c0_i32 = arith.constant 0 : i32
    %c0_i32_0 = arith.constant 0 : i32
    return %arg0, %c0_i32, %arg1 : i32, i32, i32
  }
}

</mosaic_0001>

<bundles_post_ra>
// kernel: tpu_custom_call.1
= control target key start
LH: loop header
LB: loop body
LE: loop exit
PB: predicated region body
PF: predicated region fallthrough
CT: control target
= control target key end

     0   :  { %s1072_s0 = inlined_call_operand.vmem [shape: f32[8,16], index: 0, kind: input, shape index: {}]   ;;  %s1073_s1 = inlined_call_operand.vmem [shape: f32[8,2], index: 1, kind: input, shape index: {}]   ;;  %s1074_s2 = inlined_call_operand.hbm [shape: f32[2,2,4,256], index: 2, kind: input, shape index: {}]   ;;  %s1075_s3 = inlined_call_operand.hbm [shape: f32[2,2,4,256], index: 3, kind: input, shape index: {}]   ;;  %s1076_s4 = inlined_call_operand.hbm [shape: f32[2,8,128], index: 4, kind: output, shape index: {}]  }
   0x1   :  { %1081 = sst [smem:[#allocation12_spill]] %s1074_s2 }
   0x2   :  { %9 = vsyncpa [#allocation3], 0 }
   0x3   :  { %11 = vsyncpa [#allocation3 + $0x1], 0 }
   0x4   :  { %12 = vsyncpa [#allocation6], 0 }
   0x5   :  { %14 = vsyncpa [#allocation6 + $0x1], 0 }
   0x6   :  { %15 = vsyncpa [#allocation4], 0 }
   0x7   :  { %17 = vsyncpa [#allocation4 + $0x1], 0  ;;  %s828_s15 = smov 0   ;;  %s830_s16 = smov 0  }
   0x8   :  { %s832_s17 = smov 0   ;;  %s834_s18 = smov 0  }
   0x9   :  { %s836_s19 = smov 0   ;;  %s838_s20 = smov 0  }
   0xa LB: > { %s520_s21 = sadd.s32 4294967295, %s790_s20   ;;  %s521_s22 = sadd.s32 4294967294, %s790_s20   ;;  %s790_s20 = sphi %s838_s20, %s23_s20   ;;  %s786_s19 = sphi %s836_s19, %s1100_s19   ;;  %s782_s18 = sphi %s834_s18, %s1099_s18   ;;  %s778_s17 = sphi %s832_s17, %s1098_s17   ;;  %s774_s16 = sphi %s830_s16, %s1097_s16   ;;  %s770_s15 = sphi %s828_s15, %s1096_s15  }
   0xb   : > { %s35_s23 = sadd.s32 1, %s786_s19  ;;  %s86_s24 = sadd.s32 1, %s778_s17 }
   0xc   : > { %p37_p0 = scmp.ge.s32.totalorder %s35_s23, 2  ;;  %p93_p1 = scmp.ne.s32.totalorder %s778_s17, %s774_s16 }
   0xd   : > { %p94_p2 = scmp.eq.s32.totalorder %s790_s20, 0  ;;  %p99_p3 = scmp.ne.s32.totalorder %s774_s16, %s770_s15 }
   0xe   : > { %s1102_s23 = smov (%p37_p0, %s35_s23), 0  ;;  %p100_p5 = scmp.eq.s32.totalorder %s520_s21, 0 }
   0xf   : > { %1082 = sst [smem:[#allocation11_spill]] %s1102_s23  ;;  %p869_p4 = por %p94_p2, %p93_p1 }
  0x10   : > { %s81_s26 = ssub.s32 %s786_s19, %s1102_s23  ;;  %p155_p6 = scmp.eq.s32.totalorder %s520_s21, 1 }
  0x11   : > { %p84_p7 = scmp.eq.s32.totalorder %s81_s26, 0  ;;  %p875_p8 = por %p100_p5, %p99_p3 }
  0x12   : > { %p879_p9 = por %p155_p6, %p93_p1  ;;  %p161_p10 = scmp.eq.s32.totalorder %s521_s22, 1 }
  0x13   : > { %s1084_s27 = scalar_select %p875_p8, 1, 0 }
  0x14   : > { %s1085_s28 = scalar_select %p879_p9, 1, 0 }
  0x15   : > { %s884_s29 = scalar_select %p84_p7, %s778_s17, %s86_s24  }
  0x16   : > { %p886_p11 = por %p161_p10, %p99_p3  ;;  %p573_p13 = scmp.lt.s32.totalorder %s790_s20, 2 }
  0x17   : > { %s893_s5 = sand.u32 1, %s778_s17   ;;  %s541_s7 = sshll.u32 %s786_s19, 8 }
  0x18   : > { %s1086_s30 = scalar_select %p886_p11, 1, 0 }
  0x19   : > { %s524_s6 = sshll.u32 %s893_s5, 3  ;;  %s1087_s2 = sld [smem:[#allocation12_spill]] }
  0x1a   : > { %s191_s11 = scalar_lea.vmem [#allocation2], %s524_s6  ;;  %p910_p0 = pnand %p573_p13, %p869_p4 }
  0x1b   : > { %s199_s12 = sshll.u32 %s191_s11, 4  ;;  %s188_s14 = scalar_lea.sflag [#allocation3], %s893_s5  ;;  %s906_s12 = int_to_ptr.vmem [resolvable:$true] %s199_s12 }
  0x1c   : > { %p645_p2 = pneg %p910_p0 }
  0x1f   : > { %s902_s10 = scalar_lea.hbm %s1087_s2, %s541_s7  ;;  %s648_s26 = scalar_lea.hbm %s1087_s2, 512 }
  0x20   : > { %s643_s21 = scalar_lea.hbm %s902_s10, 128  ;;  %p649_p4 = scmp.lt.u32.totalorder %s902_s10, %s1087_s2 }
  0x21   : > { %p644_p1 = scmp.ne.s32.totalorder %s902_s10, %s643_s21  ;;  %p650_p6 = scmp.lt.u32.totalorder %s648_s26, %s643_s21 }
  0x22   : > { %p652_p10 = scmp.lt.u32.totalorder %s643_s21, %s902_s10 }
  0x23   : > { %p646_p3 = pnand %p645_p2, %p644_p1  ;;  %p651_p7 = por %p650_p6, %p649_p4 }
  0x25   : > { %p647_p5 = pneg %p646_p3  ;;  %p653_p13 = por %p652_p10, %p651_p7 }
  0x27   : > { %p654_p12 = pnand %p653_p13, %p647_p5 }
  0x29   : > { %657 = shalt.err (!%p654_p12)
}
  0x2a   : > { %s658_s9 = scalar_lea.vmem %s906_s12, 128  ;;  %s792_s11 = smov [#allocation2]  }
  0x2b   : > { %p659_p1 = scmp.ne.s32.totalorder %s906_s12, %s658_s9  ;;  %s663_s22 = sshll.u32 %s792_s11, 4  ;;  %s664_s22 = int_to_ptr.vmem [resolvable:$false] %s663_s22 }
  0x2c   : > { %s665_s24 = scalar_lea.vmem %s664_s22, 256  ;;  %p666_p9 = scmp.lt.s32.totalorder %s906_s12, %s664_s22 }
  0x2d   : > { %p661_p3 = pnand %p659_p1, %p645_p2  ;;  %p667_p4 = scmp.lt.s32.totalorder %s665_s24, %s658_s9 }
  0x2f   : > { %p662_p11 = pneg %p661_p3  ;;  %p668_p6 = por %p667_p4, %p666_p9 }
  0x31   : > { %p669_p7 = pnand %p668_p6, %p662_p11 }
  0x33   : > { %672 = shalt.err (!%p669_p7)
}
  0x34   : > { %s1079_s21 = smov 128   ;;  %s794_s26 = smov 64  }
  0x35   : > { %s795_s25 = smov 4   ;;  %p530_p9 = scmp.ge.s32.totalorder %s790_s20, 1 }
  0x36   : > { %565 = dma.hbm_to_vmem [thread:$0]  (!%p910_p0), %s902_s10, 128, %s906_s12, %s188_s14, %s1079_s21, %s794_s26, %s795_s25  }
  0x37   : > { %p230_p11 = scmp.lt.s32.totalorder %s790_s20, 3  ;;  %s453_s22 = scalar_lea.hbm %s1075_s3, %s541_s7 }
  0x38   : > { %s956_s24 = scalar_lea.hbm %s453_s22, 64  ;;  %s213_s2 = scalar_lea.vmem [#allocation5], %s524_s6 }
  0x39   : > { %p947_p12 = pnand %p530_p9, %p230_p11  ;;  %s222_s23 = sshll.u32 %s213_s2, 4  ;;  %s960_s23 = int_to_ptr.vmem [resolvable:$true] %s222_s23 }
  0x3a   : > { %s210_s10 = scalar_lea.sflag [#allocation6], %s893_s5  ;;  %s703_s12 = scalar_lea.hbm %s453_s22, 192 }
  0x3b   : > { %p674_p5 = scmp.ne.s32.totalorder %s956_s24, %s703_s12  ;;  %s678_s7 = scalar_lea.hbm %s1075_s3, 512 }
  0x3c   : > { %p679_p1 = scmp.lt.u32.totalorder %s956_s24, %s1075_s3  ;;  %p680_p3 = scmp.lt.u32.totalorder %s678_s7, %s703_s12 }
  0x3d   : > { %p676_p10 = pnand %p674_p5, %p645_p2  ;;  %p682_p6 = scmp.lt.u32.totalorder %s703_s12, %s956_s24 }
  0x3e   : > { %p681_p4 = por %p680_p3, %p679_p1 }
  0x3f   : > { %p677_p13 = pneg %p676_p10 }
  0x40   : > { %p683_p7 = por %p682_p6, %p681_p4 }
  0x42   : > { %p684_p9 = pnand %p683_p7, %p677_p13 }
  0x44   : > { %687 = shalt.err (!%p684_p9)
}
  0x45   : > { %s688_s2 = scalar_lea.vmem %s960_s23, 128  ;;  %s796_s6 = smov [#allocation5]  }
  0x46   : > { %p689_p11 = scmp.ne.s32.totalorder %s960_s23, %s688_s2  ;;  %s693_s22 = sshll.u32 %s796_s6, 4  ;;  %s694_s22 = int_to_ptr.vmem [resolvable:$false] %s693_s22 }
  0x47   : > { %s695_s21 = scalar_lea.vmem %s694_s22, 256  ;;  %p696_p8 = scmp.lt.s32.totalorder %s960_s23, %s694_s22 }
  0x48   : > { %p691_p5 = pnand %p689_p11, %p645_p2  ;;  %p697_p1 = scmp.lt.s32.totalorder %s695_s21, %s688_s2 }
  0x4a   : > { %p692_p10 = pneg %p691_p5  ;;  %p698_p3 = por %p697_p1, %p696_p8 }
  0x4c   : > { %p699_p4 = pnand %p698_p3, %p692_p10 }
  0x4e   : > { %702 = shalt.err (!%p699_p4)
}
  0x4f   : > { %s1090_s12 = smov 128   ;;  %234 = sbr.rel (%p947_p12) target bundleno = 452 (0x1c4), region = 36 }
  0x50   : > { %568 = dma.hbm_to_vmem [thread:$0]  (!%p910_p0), %s956_s24, 128, %s960_s23, %s210_s10, %s1090_s12, %s794_s26, %s795_s25  }
  0x51   : > { %s993_s14 = sand.u32 (!%p947_p12), 1, %s774_s16   ;;  %p1091_p8 = scmp.ne.s32.totalorder (!%p947_p12), %s1084_s27, 0 }
  0x52   : > { %s996_s9 = sshll.u32 (!%p947_p12), %s993_s14, 3  ;;  %s237_s13 = scalar_lea.sflag (!%p947_p12), [#allocation3], %s993_s14 }
  0x53   : > { %s240_s7 = scalar_lea.vmem (!%p947_p12), [#allocation2], %s996_s9 }
  0x56   : > { %757 = dma.done.wait (%p1091_p8), %s237_s13, 128  }
  0x57   : > { %759 = vsyncadd (%p1091_p8), %s237_s13, 4294967168  ;;  %s246_s23 = scalar_lea.sflag [#allocation6], %s993_s14  ;;  %s249_s5 = scalar_lea.vmem [#allocation5], %s996_s9 }
  0x58   : > { %761 = dma.done.wait (%p1091_p8), %s246_s23, 128  }
  0x59   : > { %763 = vsyncadd (%p1091_p8), %s246_s23, 4294967168  ;;  %v797_v0 = vmov 0.0|0.0   ;;  %vm310_vm0 = vcmask 1043456   ;;  %v534_v1 = vld [vmem:[%s240_s7 + $0x4] sm:$0xf]  ;;  %vm798_vm1 = vmmov 0  }
  0x5a   : > { %553 = vmatprep.subr.bf16.mxu0 %v797_v0  ;;  %v535_v2 = vld [vmem:[%s249_s5 + $0x4] sm:$0xf]  ;;  %v280_v3 = vld [vmem:[%s240_s7] sm:$0xf]  ;;  %v305_v5 = vrot.slane %v534_v1, 4  ;;  %v799_v7 = vmov 0.0  }
  0x5b   : > { %v631_v4 = vpack.i.bf16 %v535_v2, %v534_v1  ;;  %v283_v6 = vld [vmem:[%s249_s5] sm:$0xf]  ;;  %550 = vmatprep.mubr.msk.f32.mxu0 %vm798_vm1, %v799_v7  ;;  %s800_s26 = smov 127   ;;  %v314_v10 = vld [vmem:[%s1073_s1] sm:$0xff]  ;;  %v801_v11 = vmov 0   ;;  %vm292_vm2 = vcmask 1039360  }
  0x5c   : > { %v636_v8 = vpack.i.bf16 %v283_v6, %v280_v3  ;;  %v311_v9 = vsel %vm310_vm0, %v280_v3, %v305_v5  ;;  %641 = vset.pattern.permute.xlu1 %v801_v11  ;;  %642 = vset.pattern.permute.xlu0 %v801_v11  ;;  %v313_v23 = vld [vmem:[%s1072_s0] sm:$0xff]  ;;  %vm320_vm3 = vcmask 130048   ;;  %s538_s10 = sshll.u32 %s782_s18, 7  ;;  %s278_s11 = scalar_lea.vmem [#allocation7], %s996_s9 }
  0x5d   : > { %632 = vrot.lane.b32.xlu0 %v631_v4, %s800_s26  ;;  %317 = vperm.xlu1 %641, %v314_v10   ;;  %s413_s2 = sshll.u32 %s278_s11, 4  ;;  %s1023_s21 = scalar_lea.hbm %s1076_s4, %s538_s10  ;;  %s1025_s2 = int_to_ptr.vmem [resolvable:$true] %s413_s2 }
  0x5e   : > { %s399_s12 = scalar_lea.sflag [#allocation4], %s993_s14  ;;  %s704_s13 = scalar_lea.vmem %s1025_s2, 128 }
  0x5f   : > { %p705_p0 = scmp.ne.s32.totalorder %s1025_s2, %s704_s13  ;;  %p1092_p2 = scmp.ne.s32.totalorder %s1085_s28, 0 }
  0x60   : > { %s802_s18 = smov [#allocation7]  }
  0x61   : > { %637 = vrot.lane.b32.xlu0 %v636_v8, %s800_s26  ;;  %p706_p12 = pnand %p705_p0, %p1092_p2  ;;  %s708_s9 = sshll.u32 %s802_s18, 4  ;;  %s709_s9 = int_to_ptr.vmem [resolvable:$false] %s708_s9 }
  0x62   : > { %s710_s7 = scalar_lea.vmem %s709_s9, 256  ;;  %p711_p6 = scmp.lt.s32.totalorder %s1025_s2, %s709_s9 }
  0x63   : > { %p707_p13 = pneg %p706_p12  ;;  %p712_p7 = scmp.lt.s32.totalorder %s710_s7, %s704_s13 }
  0x65   : > { %p713_p9 = por %p712_p7, %p711_p6 }
  0x67   : > { %p714_p11 = pnand %p713_p9, %p707_p13 }
  0xcf   : > { %v633_v12 = vpop.permute.xlu0 %632 }
  0xd0   : > { %v635_v13 = vunpack.i.h.bf16 %v633_v12  ;;  %v634_v14 = vunpack.i.l.bf16 %v633_v12 }
  0xd2   : > { %v304_v15 = vsel %vm292_vm2, %v634_v14, %v635_v13 }
  0xd3   : > { %v638_v16 = vpop.permute.xlu0 %637  ;;  %v308_v19 = vrot.slane %v304_v15, 4 }
  0xd4   : > { %v640_v17 = vunpack.i.h.bf16 %v638_v16  ;;  %v639_v18 = vunpack.i.l.bf16 %v638_v16 }
  0xd6   : > { %v293_v20 = vsel %vm292_vm2, %v639_v18, %v640_v17 }
  0xd7   : > { %v312_v21 = vsel %vm310_vm0, %v293_v20, %v308_v19 }
  0xd8   : > { %v554_v22 = vpack.c.bf16 %v312_v21, %v311_v9 }
  0xda   : > { %555 = vmatpush3.bf16.msra.mxu0 %v554_v22 }
  0xdc   : > { %v318_v24 = vpop.permute.xlu1 %317 }
  0xdd   : > { %551 = vmatmul.mubr.msk.f32.vlgmr.msra.gmra.mrb[0].mxu0 %vm320_vm3, %v313_v23 }
 0x1b0   : > { %v390_v25 = vpop.f32.mrb[0].mxu0 }
 0x1b1   : > { %v391_v26 = vadd.f32 %v390_v25, %v318_v24  ;;  %v552_v27 = vpop.f32.mrb[1].mxu0 }
 0x1b3   : > { %vm394_vm4 = vcmp.ge.f32.partialorder %v391_v26, 0.0  ;;  %v395_v28 = vmul.f32 0.0, %v391_v26 }
 0x1b5   : > { %v396_v29 = vsel %vm394_vm4, %v391_v26, %v395_v28 }
 0x1b6   : > { %397 = vst [vmem:[%s278_s11] sm:$0xff] %v396_v29 }
 0x1b7   : > { %717 = shalt.err (!%p714_p11)
}
 0x1b8   : > { %s718_s14 = scalar_lea.hbm %s1023_s21, 128  ;;  %s722_s26 = scalar_lea.hbm %s1076_s4, 256 }
 0x1b9   : > { %p719_p5 = scmp.ne.s32.totalorder %s1023_s21, %s718_s14  ;;  %p723_p3 = scmp.lt.u32.totalorder %s1023_s21, %s1076_s4 }
 0x1ba   : > { %p724_p4 = scmp.lt.u32.totalorder %s722_s26, %s718_s14  ;;  %p726_p0 = scmp.lt.u32.totalorder %s718_s14, %s1023_s21 }
 0x1bb   : > { %p720_p10 = pnand %p719_p5, %p1092_p2 }
 0x1bc   : > { %p725_p8 = por %p724_p4, %p723_p3 }
 0x1bd   : > { %p721_p1 = pneg %p720_p10 }
 0x1be   : > { %p727_p12 = por %p726_p0, %p725_p8 }
 0x1c0   : > { %p728_p13 = pnand %p727_p12, %p721_p1 }
 0x1c2   : > { %731 = shalt.err (!%p728_p13)
}
 0x1c3   : > { %560 = dma.vmem_to_hbm [thread:$0]  (%p1092_p2), %s1025_s2, 128, %s1023_s21, %s399_s12  }
 0x1c4 PF: > { %s425_s8 = sand.u32 1, %s770_s15   ;;  %p1093_p6 = scmp.ne.s32.totalorder %s1086_s30, 0 }
 0x1c5   : > { %p1094_p7 = scmp.ge.s32.totalorder %s790_s20, 2  ;;  %s426_s24 = scalar_lea.sflag [#allocation4], %s425_s8 }
 0x1c7   : > { %p570_p9 = pnand %p1094_p7, %p1093_p6 }
 0x1c9   : > { %765 = dma.done.wait (!%p570_p9), %s426_s24, 128  }
 0x1ca   : > { %767 = vsyncadd (!%p570_p9), %s426_s24, 4294967168  ;;  %s23_s20 = sadd.s32 1, %s790_s20   ;;  %s1095_s28 = sld [smem:[#allocation11_spill]] }
 0x1cb   : > { %p20_p11 = scmp.ge.s32.totalorder %s23_s20, 4   ;;  %s1096_s15 = smov %s774_s16 }
 0x1cc   : > { %s1097_s16 = smov %s778_s17  ;;  %s1098_s17 = smov %s884_s29 }
 0x1cd   : > { %s1099_s18 = smov %s786_s19  ;;  %22 = sbr.rel (!%p20_p11) target bundleno = 10 (0xa), region = 96 }
 0x1d0   : > { %s1100_s19 = smov %s1095_s28 }
 0x1d4   :  { %431 = vsyncpa [#allocation3], 1 }
 0x1d5   :  { %433 = vsyncpa [#allocation3 + $0x1], 1 }
 0x1d6   :  { %434 = vsyncpa [#allocation6], 1 }
 0x1d7   :  { %436 = vsyncpa [#allocation6 + $0x1], 1 }
 0x1d8   :  { %437 = vsyncpa [#allocation4], 1 }
 0x1d9   :  { %439 = vsyncpa [#allocation4 + $0x1], 1 }

</bundles_post_ra>
